<compile_context>
chip_gen: v7x
topology: tpu7x:2x2x1
jax: 0.10.0
libtpu: 0.0.40
codegen_flags: <defaults>
</compile_context>

<pallas_src>
import jax
import jax.numpy as jnp
from jax.experimental import pallas as pl
from jax.experimental.pallas import tpu as pltpu


# Keep both v7x TensorCores busy (and give the DMA pipeline some depth).
_MIN_GRID_STEPS = 4


def _make_delta3(radius: int) -> jnp.ndarray:
    """(3, dxy): rows 0,1 replicate torch.meshgrid(dx, dy, indexing='ij') deltas,
    row 2 is all-ones so the softmax denominator rides the same MXU matmul."""
    side = 2 * radius + 1
    dx = jnp.linspace(-radius, radius, side, dtype=jnp.float32)
    dy = jnp.linspace(-radius, radius, side, dtype=jnp.float32)
    gx, gy = jnp.meshgrid(dx, dy, indexing="ij")                    # (side, side)
    delta = jnp.stack([gx, gy], axis=-1).reshape(side * side, 2).T  # (2, dxy)
    ones = jnp.ones((1, side * side), jnp.float32)
    return jnp.concatenate([delta, ones], axis=0)                   # (3, dxy)


def _make_kernel(temperature: float):
    temperature = float(temperature)
    apply_temp = temperature != 1.0
    inv_temp = 1.0 / temperature

    def kernel(delta_ref, cost_ref, out_ref):
        # cost_ref: (1, dxy, T)   delta_ref: (3, dxy)   out_ref: (1, 2, T)
        c = cost_ref[0].astype(jnp.float32)                # (dxy, T)
        m = jnp.max(c, axis=0, keepdims=True)              # (1, T)  sublane reduce (XLU)
        z = c - m
        if apply_temp:                                     # skipped when T == 1.0
            z = z * inv_temp                               # (c - max c)/T == c/T - max(c/T)
        # NOTE: on a partial last spatial tile the padded lanes hold stale/garbage data.
        # Every op below is lane-local and the output store is masked, so nothing leaks.
        e = jnp.exp(z)                                     # (dxy, T), unnormalized
        # (3, dxy) @ (dxy, T) on the (otherwise idle) MXU:
        #   rows 0,1 = sum(delta * e), row 2 = sum(e) (the softmax denominator).
        num = jnp.dot(delta_ref[...], e, preferred_element_type=jnp.float32)
        den = num[2:3]                                     # (1, T)
        inv = pl.reciprocal(den, approx=True)              # EUP slot (free-ish)
        inv = inv * (2.0 - den * inv)                      # one Newton-Raphson step -> ~f32 exact
        out_ref[0] = (num[0:2] * inv).astype(out_ref.dtype)

    return kernel


def _chip_budget():
    """Returns (target lane tile, input buffer count, scoped VMEM limit bytes)."""
    try:
        vmem = int(pltpu.get_tpu_info().vmem_capacity_bytes)
    except Exception:
        return 16384, 2, 48 << 20                 # conservative fallback
    if vmem >= (100 << 20):                       # v5e / v6e: 128 MiB physical VMEM
        return 32768, 2, 64 << 20
    # v7x-class: 64 MiB / TC, faster HBM -> smaller tiles, 3-deep input buffering.
    return 16384, 3, min(48 << 20, (vmem * 3) // 4)


def _choose_tile_hw(hw: int, batch: int, target: int) -> int:
    """Balanced, lane-aligned spatial tile that also guarantees enough grid steps."""
    n_tiles = max(pl.cdiv(hw, target), pl.cdiv(_MIN_GRID_STEPS, max(batch, 1)))
    if n_tiles <= 1:
        return hw                                  # full dim (always a legal block shape)
    tile = ((pl.cdiv(hw, n_tiles) + 127) // 128) * 128   # balanced, multiple of 128
    if tile < 128 or tile >= hw:
        return hw                                  # can't split below one lane group
    return tile


def _tile_footprint_bytes(dxy: int, tile_hw: int, n_in_bufs: int) -> int:
    """Conservative f32 VMEM footprint estimate for one grid step."""
    dxy_pad = ((dxy + 7) // 8) * 8                 # sublane padding (49 -> 56)
    in_b = n_in_bufs * dxy_pad * tile_hw * 4       # pipelined cost buffers
    tmp_b = 2 * dxy_pad * tile_hw * 4              # z / e live f32 temporaries
    out_b = 2 * 8 * tile_hw * 4                    # double-buffered output (2 rows -> 8 sublanes)
    return in_b + tmp_b + out_b + (1 << 20)        # + slack for delta / misc


def soft_argmax_flow_regression(cost: jnp.ndarray, radius: int,
                                temperature: float = 1.0) -> jnp.ndarray:
    """cost: (B, dxy, H, W) with dxy == (2*radius+1)**2. Returns (B, 2, H, W) float32."""
    assert temperature > 0, "temperature must be positive (softmax temperature fold)"
    B, dxy, H, W = cost.shape
    assert dxy == (2 * radius + 1) ** 2
    HW = H * W

    target_hw, n_in_bufs, vmem_cap = _chip_budget()
    tile_hw = _choose_tile_hw(HW, B, target_hw)
    # Defensive: shrink the tile if its estimated footprint exceeds the scoped VMEM cap
    # (only triggers for very large radius; keeps the config legal on all generations).
    while tile_hw > 256 and _tile_footprint_bytes(dxy, tile_hw, n_in_bufs) > vmem_cap:
        tile_hw = ((tile_hw // 2) // 128) * 128
    n_hw = pl.cdiv(HW, tile_hw)

    delta3 = _make_delta3(radius)                  # (3, dxy), tiny
    cost_flat = cost.reshape(B, dxy, HW)

    cost_est = pl.CostEstimate(
        flops=int(B * HW * (8 * dxy + 8)),
        transcendentals=int(B * HW * (dxy + 1)),
        bytes_accessed=int(cost_flat.size * jnp.dtype(cost.dtype).itemsize
                           + B * 2 * HW * 4 + delta3.size * 4),
    )

    # Extra input buffering only on the small-VMEM / fast-HBM chips (v7x); elsewhere
    # the default double-buffering is already DMA-bound-friendly and proven clean.
    cost_spec_kwargs = {}
    if n_in_bufs != 2:
        cost_spec_kwargs["pipeline_mode"] = pl.Buffered(n_in_bufs)

    out_flat = pl.pallas_call(
        _make_kernel(temperature),
        # Output always f32: it is tiny and avoids precision loss for low-precision costs.
        out_shape=jax.ShapeDtypeStruct((B, 2, HW), jnp.float32),
        grid=(B, n_hw),
        in_specs=[
            pl.BlockSpec((3, dxy), lambda b, s: (0, 0)),              # delta (static, ~600 B)
            pl.BlockSpec((1, dxy, tile_hw), lambda b, s: (b, 0, s),   # cost tile
                         **cost_spec_kwargs),
        ],
        out_specs=pl.BlockSpec((1, 2, tile_hw), lambda b, s: (b, 0, s)),
        compiler_params=pltpu.CompilerParams(
            dimension_semantics=("parallel", "parallel"),
            vmem_limit_bytes=int(vmem_cap),
        ),
        cost_estimate=cost_est,
    )(delta3, cost_flat)

    return out_flat.reshape(B, 2, H, W)


def _reference(cost, radius, temperature=1.0):
    delta = _make_delta3(radius)[:2]                          # (2, dxy)
    score = jax.nn.softmax(cost / temperature, axis=1)        # (B, dxy, H, W)
    return jnp.einsum("cd,bdhw->bchw", delta, score)


if __name__ == "__main__":
    radius = 3
    dxy = (2 * radius + 1) ** 2                               # 49
    key = jax.random.PRNGKey(0)
    k1, k2, k3 = jax.random.split(key, 3)

    # Small primary check (temperature = 1.0 fast path; HW=256 splits into 2x128 tiles
    # so the >=4-grid-step / megacore guard is exercised even at this size).
    B, H, W = 2, 16, 16
    cost = jax.random.normal(k1, (B, dxy, H, W), dtype=jnp.float32)
    out = jax.block_until_ready(soft_argmax_flow_regression(cost, radius, 1.0))
    ref = _reference(cost, radius, 1.0)
    assert out.shape == (B, 2, H, W)
    assert jnp.allclose(out, ref, atol=1e-4, rtol=1e-4), "mismatch vs reference (T=1)"

    # Temperature != 1.0 path.
    out_t = jax.block_until_ready(soft_argmax_flow_regression(cost, radius, 0.5))
    ref_t = _reference(cost, radius, 0.5)
    assert jnp.allclose(out_t, ref_t, atol=1e-4, rtol=1e-4), "mismatch vs reference (T=0.5)"

    # Balanced multi-tile spatial path (HW = 9216 -> 4 even 2304-lane tiles, no tail).
    cost_big = jax.random.normal(k2, (1, dxy, 96, 96), dtype=jnp.float32)
    out_big = jax.block_until_ready(soft_argmax_flow_regression(cost_big, radius, 1.0))
    ref_big = _reference(cost_big, radius, 1.0)
    assert jnp.allclose(out_big, ref_big, atol=1e-4, rtol=1e-4), "mismatch vs reference (tiled)"

    # Ragged spatial size (HW = 900 -> 128-aligned tiles with a masked partial tail).
    cost_rag = jax.random.normal(k3, (1, dxy, 30, 30), dtype=jnp.float32)
    out_rag = jax.block_until_ready(soft_argmax_flow_regression(cost_rag, radius, 1.0))
    ref_rag = _reference(cost_rag, radius, 1.0)
    assert jnp.allclose(out_rag, ref_rag, atol=1e-4, rtol=1e-4), "mismatch vs reference (ragged)"

    print("KERNEL_OK")
</pallas_src>

<mosaic_0001>
module attributes {stable_mosaic.version = 11 : i64} {
  func.func @kernel(%arg0: i32, %arg1: i32, %arg2: memref<3x49xf32, #tpu.memory_space<vmem>>, %arg3: memref<1x49x128xf32, #tpu.memory_space<vmem>>, %arg4: memref<1x2x128xf32, #tpu.memory_space<vmem>>) attributes {dimension_semantics = [#tpu.dimension_semantics<parallel>, #tpu.dimension_semantics<parallel>], iteration_bounds = array<i64: 2, 2>, scalar_prefetch = 0 : i64, scratch_operands = 0 : i64, tpu.core_type = #tpu.core_type<tc>, window_params = [{pipeline_mode = #tpu.pipeline_mode<synchronous>, transform_indices = @transform_0, window_bounds = array<i64: 3, 49>}, {transform_indices = @transform_1, window_bounds = array<i64: 1, 49, 128>}, {transform_indices = @transform_2, window_bounds = array<i64: 1, 2, 128>}]} {
    %c0 = arith.constant 0 : index
    %c0_0 = arith.constant 0 : index
    %c0_1 = arith.constant 0 : index
    %0 = vector.load %arg3[%c0, %c0_0, %c0_1] : memref<1x49x128xf32, #tpu.memory_space<vmem>>, vector<1x49x128xf32>
    %1 = vector.shape_cast %0 : vector<1x49x128xf32> to vector<49x128xf32>
    %cst = arith.constant dense<0xFF800000> : vector<128xf32>
    %2 = vector.multi_reduction <maximumf>, %1, %cst [0] : vector<49x128xf32> to vector<128xf32>
    %3 = vector.shape_cast %2 : vector<128xf32> to vector<1x128xf32>
    %4 = vector.broadcast %3 : vector<1x128xf32> to vector<49x128xf32>
    %5 = arith.subf %1, %4 : vector<49x128xf32>
    %6 = math.exp %5 : vector<49x128xf32>
    %c0_2 = arith.constant 0 : index
    %c0_3 = arith.constant 0 : index
    %7 = vector.load %arg2[%c0_2, %c0_3] : memref<3x49xf32, #tpu.memory_space<vmem>>, vector<3x49xf32>
    %cst_4 = arith.constant dense<0.000000e+00> : vector<3x128xf32>
    %8 = tpu.matmul %7, %6, %cst_4 {dimension_numbers = #tpu.dot_dimension_numbers<[1], [0], [0], [1], [0, 0, 1, 1], [], []>} : vector<3x49xf32>, vector<49x128xf32>, vector<3x128xf32> -> vector<3x128xf32>
    %9 = vector.extract_strided_slice %8 {offsets = [2, 0], sizes = [1, 128], strides = [1, 1]} : vector<3x128xf32> to vector<1x128xf32>
    %10 = tpu.reciprocal %9 {approx = true} : vector<1x128xf32> -> vector<1x128xf32>
    %11 = arith.mulf %9, %10 : vector<1x128xf32>
    %cst_5 = arith.constant 2.000000e+00 : f32
    %12 = vector.broadcast %cst_5 : f32 to vector<1x128xf32>
    %13 = arith.subf %12, %11 : vector<1x128xf32>
    %14 = arith.mulf %10, %13 : vector<1x128xf32>
    %15 = vector.extract_strided_slice %8 {offsets = [0, 0], sizes = [2, 128], strides = [1, 1]} : vector<3x128xf32> to vector<2x128xf32>
    %16 = vector.broadcast %14 : vector<1x128xf32> to vector<2x128xf32>
    %17 = arith.mulf %15, %16 : vector<2x128xf32>
    %c0_6 = arith.constant 0 : index
    %c0_7 = arith.constant 0 : index
    %c0_8 = arith.constant 0 : index
    %18 = vector.load %arg4[%c0_6, %c0_7, %c0_8] : memref<1x2x128xf32, #tpu.memory_space<vmem>>, vector<1x2x128xf32>
    %19 = vector.shape_cast %18 : vector<1x2x128xf32> to vector<2x128xf32>
    %20 = vector.shape_cast %17 : vector<2x128xf32> to vector<1x2x128xf32>
    tpu.vector_store %arg4[%c0_6, %c0_7, %c0_8], %20 {strides = array<i32>} : memref<1x2x128xf32, #tpu.memory_space<vmem>>, vector<1x2x128xf32>,
    return
  }
  func.func @transform_0(%arg0: i32, %arg1: i32) -> (i32, i32) {
    %c0_i32 = arith.constant 0 : i32
    %c0_i32_0 = arith.constant 0 : i32
    %c0_i32_1 = arith.constant 0 : i32
    return %c0_i32, %c0_i32_0 : i32, i32
  }
  func.func @transform_1(%arg0: i32, %arg1: i32) -> (i32, i32, i32) {
    %c0_i32 = arith.constant 0 : i32
    %c0_i32_0 = arith.constant 0 : i32
    return %arg0, %c0_i32, %arg1 : i32, i32, i32
  }
  func.func @transform_2(%arg0: i32, %arg1: i32) -> (i32, i32, i32) {
    %c0_i32 = arith.constant 0 : i32
    %c0_i32_0 = arith.constant 0 : i32
    return %arg0, %c0_i32, %arg1 : i32, i32, i32
  }
}

</mosaic_0001>

<bundles_post_ra>
// kernel: tpu_custom_call.1
= control target key start
LH: loop header
LB: loop body
LE: loop exit
PB: predicated region body
PF: predicated region fallthrough
CT: control target
= control target key end

     0   :  { %7 = vsyncpa [#allocation4], 0  ;;  %s854_s0 = inlined_call_operand.vmem [shape: f32[3,49], index: 0, kind: input, shape index: {}]   ;;  %s855_s1 = inlined_call_operand.vmem [shape: f32[2,49,256], index: 1, kind: input, shape index: {}]   ;;  %s856_s2 = inlined_call_operand.hbm [shape: f32[2,2,256], index: 2, kind: output, shape index: {}]  }
   0x1   :  { %9 = vsyncpa [#allocation4 + $0x1], 0  ;;  %s700_s9 = smov 0   ;;  %s702_s10 = smov 0  }
   0x2   :  { %s704_s11 = smov 0   ;;  %s706_s12 = smov 0  }
   0x3   :  { %s708_s13 = smov 0   ;;  %s710_s14 = smov 0  }
   0x4   :  { %s712_s15 = smov 0   ;;  %s714_s16 = smov 0  }
   0x5 LB: > { %s444_s17 = sadd.s32 4294967295, %s679_s16   ;;  %s445_s18 = sadd.s32 4294967294, %s679_s16   ;;  %s679_s16 = sphi %s714_s16, %s15_s16   ;;  %s675_s15 = sphi %s712_s15, %s866_s15   ;;  %s671_s14 = sphi %s710_s14, %s865_s14   ;;  %s667_s13 = sphi %s708_s13, %s864_s13   ;;  %s663_s12 = sphi %s706_s12, %s863_s12   ;;  %s659_s11 = sphi %s704_s11, %s862_s11   ;;  %s655_s10 = sphi %s702_s10, %s861_s10   ;;  %s651_s9 = sphi %s700_s9, %s860_s9  }
   0x6   : > { %s24_s19 = sadd.s32 1, %s671_s14  ;;  %s27_s20 = sadd.s32 1, %s675_s15 }
   0x7   : > { %p25_p0 = scmp.ge.s32.totalorder %s24_s19, 2  ;;  %p64_p1 = scmp.ne.s32.totalorder %s659_s11, %s655_s10 }
   0x8   : > { %p65_p2 = scmp.eq.s32.totalorder %s679_s16, 0  ;;  %p96_p5 = scmp.eq.s32.totalorder %s444_s17, 3 }
   0x9   : > { %s868_s19 = smov (%p25_p0, %s24_s19), 0  ;;  %s870_s20 = smov (!%p25_p0, %s27_s20), %s675_s15 }
   0xa   : > { %s53_s21 = ssub.s32 %s671_s14, %s868_s19  ;;  %p752_p3 = por %p65_p2, %p64_p1 }
   0xb   : > { %p29_p4 = scmp.ge.s32.totalorder %s870_s20, 2  ;;  %p101_p6 = scmp.ne.s32.totalorder %s655_s10, %s651_s9 }
   0xc   : > { %p102_p7 = scmp.eq.s32.totalorder %s445_s18, 3  ;;  %p760_p8 = por %p96_p5, %p64_p1 }
   0xd   : > { %s872_s20 = smov (%p29_p4, %s870_s20), 0  ;;  %s57_s27 = sadd.s32 1, %s659_s11 }
   0xe   : > { %p764_p9 = por %p102_p7, %p101_p6  ;;  %s52_s25 = ssub.s32 %s675_s15, %s872_s20 }
   0xf   : > { %s54_s26 = sor.u32 %s53_s21, %s52_s25  ;;  %p447_p11 = scmp.ge.s32.totalorder %s679_s16, 4 }
  0x10   : > { %p55_p10 = scmp.eq.s32.totalorder %s54_s26, 0 }
  0x11   : > { %121 = sbr.rel (%p447_p11) target bundleno = 35 (0x23), region = 20 }
  0x12   : > { %s772_s28 = scalar_select %p55_p10, %s659_s11, %s57_s27  }
  0x18   : > { %124 = sbr.rel (!%p752_p3) target bundleno = 35 (0x23), region = 24  ;;  %s126_s29 = sand.u32 (%p752_p3), 1, %s659_s11  }
  0x19   : > { %s493_s30 = smul.u32 (%p752_p3), 14, %s675_s15 }
  0x1a   : > { %s492_s3 = smul.u32 (%p752_p3), 56, %s126_s29 }
  0x1b   : > { %s130_s4 = sadd.s32 (%p752_p3), %s671_s14, %s493_s30 }
  0x1c   : > { %s448_s5 = sshll.u32 (%p752_p3), %s130_s4, 3  ;;  %s128_s17 = scalar_lea.vmem (%p752_p3), [#allocation2], %s492_s3 }
  0x1d   : > { %s132_s8 = scalar_lea.vmem (%p752_p3), %s855_s1, %s448_s5 }
  0x1e   : > { %v172_v0 = vld [vmem:[%s132_s8] sm:$0xff] (%p752_p3)  ;;  %v174_v1 = vld [vmem:[%s132_s8 + $0x10] sm:$0xff] (%p752_p3) }
  0x1f   : > { %v176_v2 = vld [vmem:[%s132_s8 + $0x20] sm:$0xff]  ;;  %173 = vst [vmem:[%s128_s17] sm:$0xff] %v172_v0  ;;  %175 = vst [vmem:[%s128_s17 + $0x8] sm:$0xff] %v174_v1  ;;  %v178_v3 = vld [vmem:[%s132_s8 + $0x30] sm:$0xff] }
  0x20   : > { %177 = vst [vmem:[%s128_s17 + $0x10] sm:$0xff] %v176_v2  ;;  %v180_v4 = vld [vmem:[%s132_s8 + $0x40] sm:$0xff]  ;;  %v182_v5 = vld [vmem:[%s132_s8 + $0x50] sm:$0xff]  ;;  %179 = vst [vmem:[%s128_s17 + $0x18] sm:$0xff] %v178_v3 }
  0x21   : > { %181 = vst [vmem:[%s128_s17 + $0x20] sm:$0xff] %v180_v4  ;;  %183 = vst [vmem:[%s128_s17 + $0x28] sm:$0xff] %v182_v5  ;;  %v184_v6 = vld [vmem:[%s132_s8 + $0x60] sm:$0xff] }
  0x22   : > { %185 = vst [vmem:[%s128_s17 + $0x30] sm:$0xff] %v184_v6 }
  0x23 PF: > { %p449_p12 = scmp.ge.s32.totalorder %s679_s16, 1  ;;  %p190_p13 = scmp.lt.s32.totalorder %s679_s16, 5 }
  0x25   : > { %p191_p0 = pnand %p449_p12, %p190_p13 }
  0x26   : > { %s786_s18 = sand.u32 (!%p191_p0), 1, %s655_s10   ;;  %v681_v7 = vmov (!%p191_p0), 0.0|0.0   ;;  %vm682_vm0 = vmmov (!%p191_p0), 0   ;;  %v683_v8 = vmov (!%p191_p0), 0.0   ;;  %vm227_vm1 = vcmask (!%p191_p0), 1040384   ;;  %s454_s29 = sshll.u32 (!%p191_p0), %s667_s13, 1 }
  0x27   : > { %194 = sbr.rel (%p191_p0) target bundleno = 342 (0x156), region = 62  ;;  %483 = vmatprep.subr.bf16.mxu0 (!%p191_p0), %v681_v7  ;;  %480 = vmatprep.mubr.msk.f32.mxu0 (!%p191_p0), %vm682_vm0, %v683_v8  ;;  %v260_v53 = vld [vmem:[%s854_s0] sm:$0x7] (!%p191_p0)  ;;  %vm261_vm2 = vcmask (!%p191_p0), 400384   ;;  %v342_v56 = vlaneseq (!%p191_p0)  ;;  %s450_s27 = sshll.u32 (!%p191_p0), %s786_s18, 1 }
  0x28   : > { %s494_s21 = smul.u32 (!%p191_p0), 56, %s786_s18  ;;  %s360_s30 = sadd.s32 (!%p191_p0), %s663_s12, %s454_s29 }
  0x29   : > { %v343_v57 = vshrl.u32 (!%p191_p0), %v342_v56, 7  ;;  %s455_s3 = sshll.u32 (!%p191_p0), %s360_s30, 5  ;;  %s217_s4 = scalar_lea.vmem (!%p191_p0), [#allocation3], %s450_s27 }
  0x2a   : > { %s199_s22 = scalar_lea.vmem (!%p191_p0), [#allocation2], %s494_s21  ;;  %s364_s5 = sshll.u32 (!%p191_p0), %s217_s4, 4  ;;  %s802_s5 = int_to_ptr.vmem [resolvable:$true] %s364_s5 }
  0x2b   : > { %v218_v9 = vld [vmem:[%s199_s22] sm:$0xff] (!%p191_p0)  ;;  %v219_v10 = vld [vmem:[%s199_s22 + $0x8] sm:$0xff] (!%p191_p0)  ;;  %v220_v11 = vld [vmem:[%s199_s22 + $0x10] sm:$0xff] (!%p191_p0)  ;;  %v344_v61 = vsub.s32 (!%p191_p0), 2, %v343_v57  ;;  %s800_s8 = scalar_lea.hbm (!%p191_p0), %s856_s2, %s455_s3  ;;  %s349_s13 = scalar_lea.sflag (!%p191_p0), [#allocation4], %s786_s18 }
  0x2c   : > { %v222_v12 = vld [vmem:[%s199_s22 + $0x20] sm:$0xff] (!%p191_p0)  ;;  %v223_v13 = vld [vmem:[%s199_s22 + $0x28] sm:$0xff] (!%p191_p0)  ;;  %v224_v14 = vld [vmem:[%s199_s22 + $0x30] sm:$0x1] (!%p191_p0)  ;;  %s585_s17 = scalar_lea.vmem (!%p191_p0), %s802_s5, 32  ;;  %s684_s12 = smov (!%p191_p0), [#allocation3]  }
  0x2d   : > { %v225_v15 = vmax.f32 (!%p191_p0), %v218_v9, %v222_v12  ;;  %v226_v16 = vmax.f32 (!%p191_p0), %v219_v10, %v223_v13  ;;  %v221_v17 = vld [vmem:[%s199_s22 + $0x18] sm:$0xff] (!%p191_p0)  ;;  %v228_v18 = vsel (!%p191_p0), %vm227_vm1, %v224_v14, -inf  ;;  %p586_p1 = scmp.ne.s32.totalorder (!%p191_p0), %s802_s5, %s585_s17  ;;  %s589_s21 = sshll.u32 (!%p191_p0), %s684_s12, 4  ;;  %s590_s21 = int_to_ptr.vmem [resolvable:$false] %s589_s21 }
  0x2e   : > { %v229_v19 = vmax.f32 %v220_v11, %v228_v18  ;;  %s591_s22 = scalar_lea.vmem %s590_s21, 64  ;;  %p592_p4 = scmp.lt.s32.totalorder %s802_s5, %s590_s21 }
  0x2f   : > { %v230_v20 = vmax.f32 %v225_v15, %v226_v16  ;;  %p587_p2 = pnand %p586_p1, %p760_p8  ;;  %p593_p5 = scmp.lt.s32.totalorder %s591_s22, %s585_s17 }
  0x30   : > { %v231_v21 = vmax.f32 %v229_v19, %v221_v17 }
  0x31   : > { %p588_p3 = pneg %p587_p2  ;;  %p594_p6 = por %p593_p5, %p592_p4 }
  0x32   : > { %v232_v22 = vmax.f32 %v230_v20, %v231_v21 }
  0x33   : > { %p595_p7 = pnand %p594_p6, %p588_p3 }
  0x34   : > { %v233_v23 = vrot.slane %v232_v22, 4 }
  0x36   : > { %v234_v24 = vmax.f32 %v232_v22, %v233_v23 }
  0x38   : > { %v235_v25 = vrot.slane %v234_v24, 2 }
  0x3a   : > { %v236_v26 = vmax.f32 %v234_v24, %v235_v25 }
  0x3c   : > { %v237_v27 = vrot.slane %v236_v26, 1 }
  0x3e   : > { %v238_v28 = vmax.f32 %v236_v26, %v237_v27 }
  0x40   : > { %v239_v29 = vsub.f32 %v218_v9, %v238_v28  ;;  %v240_v30 = vsub.f32 %v219_v10, %v238_v28  ;;  %v241_v31 = vsub.f32 %v220_v11, %v238_v28  ;;  %v242_v32 = vsub.f32 %v221_v17, %v238_v28 }
  0x41   : > { %v243_v33 = vsub.f32 %v222_v12, %v238_v28  ;;  %v244_v36 = vsub.f32 %v223_v13, %v238_v28  ;;  %v245_v41 = vsub.f32 %v224_v14, %v238_v28 }
  0x42   : > { %v246_v34 = vmul.f32 1.442695, %v239_v29  ;;  %v248_v35 = vmul.f32 1.442695, %v240_v30  ;;  %v250_v37 = vmul.f32 1.442695, %v241_v31 }
  0x43   : > { %v252_v38 = vmul.f32 1.442695, %v242_v32  ;;  %v254_v39 = vmul.f32 1.442695, %v243_v33  ;;  %v256_v40 = vmul.f32 1.442695, %v244_v36 }
  0x44   : > { %569 = vpow2.f32 %v246_v34  ;;  %v258_v42 = vmul.f32 1.442695, %v245_v41 }
  0x45   : > { %571 = vpow2.f32 %v248_v35 }
  0x46   : > { %573 = vpow2.f32 %v250_v37 }
  0x47   : > { %575 = vpow2.f32 %v252_v38 }
  0x48   : > { %577 = vpow2.f32 %v254_v39 }
  0x49   : > { %579 = vpow2.f32 %v256_v40 }
  0x4a   : > { %581 = vpow2.f32 %v258_v42 }
  0x4e   : > { %v570_v43 = vpop.eup %569 }
  0x4f   : > { %v572_v44 = vpop.eup %571 }
  0x50   : > { %v484_v45 = vpack.c.bf16 %v572_v44, %v570_v43  ;;  %v574_v46 = vpop.eup %573 }
  0x51   : > { %v576_v47 = vpop.eup %575 }
  0x52   : > { %485 = vmatpush3.bf16.msra.mxu0 %v484_v45  ;;  %v578_v48 = vpop.eup %577  ;;  %v487_v49 = vpack.c.bf16 %v576_v47, %v574_v46 }
  0x53   : > { %486 = vmatprep.subr.bf16.mxu0 %v681_v7  ;;  %v580_v50 = vpop.eup %579 }
  0x54   : > { %v490_v51 = vpack.c.bf16 %v580_v50, %v578_v48  ;;  %v582_v52 = vpop.eup %581 }
  0x56   : > { %488 = vmatpush3.bf16.msra.mxu0 %v487_v49 }
  0x57   : > { %489 = vmatprep.subr.bf16.mxu0 %v681_v7 }
  0x5a   : > { %491 = vmatpush3.bf16.msra.mxu0 %v490_v51 }
  0x5b   : > { %478 = vmatprep.subr.mxu0 %v683_v8 }
  0x5e   : > { %479 = vmatpush3.msk.msra.mxu0 %vm227_vm1, %v582_v52 }
  0x5f   : > { %481 = vmatmul.mubr.msk.f32.vlgmr.msra.gmra.mrb[0].mxu0 %vm261_vm2, %v260_v53 }
 0x132   : > { %v334_v54 = vpop.f32.mrb[0].mxu0 }
 0x133   : > { %583 = vrcp.f32 %v334_v54  ;;  %v482_v55 = vpop.f32.mrb[1].mxu0 }
 0x13d   : > { %v584_v58 = vpop.eup %583 }
 0x13e   : > { %v339_v59 = vmul.f32 %v584_v58, %v334_v54 }
 0x140   : > { %v340_v60 = vsub.f32 2.0, %v339_v59 }
 0x142   : > { %v341_v62 = vmul.f32 %v584_v58, %v340_v60 }
 0x144   : > { %v345_v63 = vrot.slane %v341_v62, %v344_v61 }
 0x146   : > { %v346_v0 = vmul.f32 %v345_v63, %v334_v54 }
 0x148   : > { %347 = vst [vmem:[%s217_s4] sm:$0x3] %v346_v0 }
 0x149   : > { %598 = shalt.err (!%p595_p7)
}
 0x14a   : > { %s599_s18 = scalar_lea.hbm %s800_s8, 32  ;;  %s603_s27 = scalar_lea.hbm %s856_s2, 128 }
 0x14b   : > { %p600_p10 = scmp.ne.s32.totalorder %s800_s8, %s599_s18  ;;  %p604_p13 = scmp.lt.u32.totalorder %s800_s8, %s856_s2 }
 0x14c   : > { %p605_p0 = scmp.lt.u32.totalorder %s603_s27, %s599_s18  ;;  %p607_p2 = scmp.lt.u32.totalorder %s599_s18, %s800_s8 }
 0x14d   : > { %p601_p11 = pnand %p600_p10, %p760_p8 }
 0x14e   : > { %p606_p1 = por %p605_p0, %p604_p13 }
 0x14f   : > { %p602_p12 = pneg %p601_p11 }
 0x150   : > { %p608_p3 = por %p607_p2, %p606_p1 }
 0x152   : > { %p609_p4 = pnand %p608_p3, %p602_p12 }
 0x154   : > { %612 = shalt.err (!%p609_p4)
}
 0x155   : > { %495 = dma.vmem_to_hbm [thread:$0]  (%p760_p8), %s802_s5, 32, %s800_s8, %s349_s13  }
 0x156 PF: > { %p501_p5 = scmp.ge.s32.totalorder %s679_s16, 2  ;;  %s376_s3 = sand.u32 1, %s651_s9  }
 0x157   : > { %s377_s4 = scalar_lea.sflag [#allocation4], %s376_s3 }
 0x158   : > { %p498_p6 = pnand %p501_p5, %p764_p9 }
 0x15a   : > { %646 = dma.done.wait (!%p498_p6), %s377_s4, 32  }
 0x15b   : > { %648 = vsyncadd (!%p498_p6), %s377_s4, 4294967264  ;;  %s15_s16 = sadd.s32 1, %s679_s16   ;;  %s860_s9 = smov %s655_s10 }
 0x15c   : > { %p12_p7 = scmp.ge.s32.totalorder %s15_s16, 6   ;;  %s861_s10 = smov %s659_s11 }
 0x15d   : > { %s862_s11 = smov %s772_s28  ;;  %s863_s12 = smov %s671_s14 }
 0x15e   : > { %s864_s13 = smov %s675_s15  ;;  %s865_s14 = smov %s868_s19 }
 0x15f   : > { %s866_s15 = smov %s872_s20  ;;  %14 = sbr.rel (!%p12_p7) target bundleno = 5 (0x5), region = 106 }
 0x166   :  { %382 = vsyncpa [#allocation4], 1 }
 0x167   :  { %384 = vsyncpa [#allocation4 + $0x1], 1 }

</bundles_post_ra>
